<compile_context>
chip_gen: v5e
topology: v5e:2x2
jax: 0.10.0
libtpu: 0.0.40
codegen_flags: <defaults>
</compile_context>

<pallas_src>
import jax
import jax.numpy as jnp
from jax import lax
from jax.experimental import pallas as pl
from jax.experimental.pallas import tpu as pltpu


_EPS = 1e-8


# ----------------------------------------------------------------------------
# Scalar handling
# ----------------------------------------------------------------------------
def _static_int_exponent(n):
    """Return abs(n) as a small Python int if it is statically known & integral.

    Accepts Python / numpy scalars and concrete (non-traced) JAX scalars;
    traced values fall through to the general exp/log path.
    """
    try:
        v = abs(float(n))            # raises for traced values
    except Exception:
        return None
    if v == round(v) and v <= 16.0:
        return int(v)
    return None


def _fold_params(beta, n, k, gamma, dt=0.0):
    """abs() + scalar prefolding in the wrapper; 6 f32 scalars live in SMEM."""
    beta_a = jnp.abs(jnp.asarray(beta, jnp.float32))
    n_a = jnp.abs(jnp.asarray(n, jnp.float32))
    k_a = jnp.abs(jnp.asarray(k, jnp.float32))
    gamma_a = jnp.abs(jnp.asarray(gamma, jnp.float32))
    inv_k = 1.0 / k_a
    n_log_k = n_a * jnp.log(k_a)
    dt_a = jnp.asarray(dt, jnp.float32)
    return jnp.stack([beta_a, gamma_a, n_a, n_log_k, inv_k, dt_a])


# ----------------------------------------------------------------------------
# In-kernel RHS on the packed (3, R, 128) tile
# ----------------------------------------------------------------------------
def _rhs(x, beta, gamma, n, n_log_k, inv_k, n_int):
    """RHS on a (3, R, 128) f32 tile: species on the leading (major) axis,
    batch filling full (8,128) vregs on the sublane/lane axes."""
    x = jnp.maximum(x, 0.0) + _EPS                     # relu(x) + eps, strictly > 0
    u = x * inv_k

    if n_int is not None:
        # Static integer exponent: repeated multiplies, zero transcendentals.
        if n_int == 0:
            t = jnp.ones_like(u)
        elif n_int == 1:
            t = u
        elif n_int == 2:
            t = u * u
        else:
            # square-and-multiply, no ones_like bootstrap (n_int >= 3 here)
            t, p, e = None, u, n_int
            while e > 0:
                if e & 1:
                    t = p if t is None else t * p
                e >>= 1
                if e:
                    p = p * p
    else:
        # General (traced / non-integer) exponent, x > 0:
        #   (x/k)^n = exp(n*log(x) - n*log(k))      (EUP-limited path)
        t = jnp.exp(n * jnp.log(x) - n_log_k)

    h = beta / (1.0 + t)                               # exact divide (mem-bound anyway)
    # Output species i needs hill of species (i-1) mod 3 -> rows [2, 0, 1].
    # Pure major-axis permutation: vreg-granular selects, no lane/sublane shuffles.
    h_perm = jnp.concatenate([h[2:3], h[0:2]], axis=0)
    return h_perm - gamma * x


def _make_rhs_kernel(n_int):
    def kernel(params_ref, x_ref, o_ref):
        beta, gamma, n, n_log_k, inv_k = (params_ref[i] for i in range(5))
        x = x_ref[...].astype(jnp.float32)
        o_ref[...] = _rhs(x, beta, gamma, n, n_log_k, inv_k, n_int).astype(o_ref.dtype)

    return kernel


def _make_euler_kernel(n_int, num_steps):
    """num_steps forward-Euler RHS evaluations fused into one kernel invocation;
    the state stays resident in VMEM across the lax.fori_loop."""

    def kernel(params_ref, x_ref, o_ref):
        beta, gamma, n, n_log_k, inv_k, dt = (params_ref[i] for i in range(6))
        x0 = x_ref[...].astype(jnp.float32)

        def body(_, x):
            return x + dt * _rhs(x, beta, gamma, n, n_log_k, inv_k, n_int)

        xf = lax.fori_loop(0, num_steps, body, x0)
        o_ref[...] = xf.astype(o_ref.dtype)

    return kernel


# ----------------------------------------------------------------------------
# Layout packing (pay the transpose/pad once, not per RHS evaluation)
# ----------------------------------------------------------------------------
def _choose_blocks(rows_needed):
    if rows_needed <= 8:
        return 1
    # >=2 blocks engages the second TensorCore on v7x via dimension_semantics
    # ("parallel",); on single-TC v5e/v6e the extra grid step costs ~0.35us.
    if rows_needed <= 2048:        # up to ~256K batch elements
        return 2
    return 4                        # very large: a few steps for DMA/compute overlap


def pack_state(x, nblocks=None):
    """[B, 3] -> (3, rows, 128) sublane/lane-dense layout (zero-padded batch)."""
    B, C = x.shape
    assert C == 3, "repressilator expects 3 species along dim 1"
    rows_needed = pl.cdiv(B, 128)
    if nblocks is None:
        nblocks = _choose_blocks(rows_needed)
    rows = pl.cdiv(rows_needed, 8 * nblocks) * 8 * nblocks   # R = rows/nblocks is mult of 8
    Bp = rows * 128
    xt = x.T                                                 # [3, B]
    if Bp != B:
        xt = jnp.pad(xt, ((0, 0), (0, Bp - B)))              # relu(0)+eps is well defined
    return xt.reshape(3, rows, 128), nblocks, rows // nblocks


def unpack_state(xt, B):
    """(3, rows, 128) -> [B, 3]."""
    return xt.reshape(3, -1)[:, :B].T


def _call(kernel, params, xt, nblocks, block_rows, out_dtype):
    rows = xt.shape[1]
    return pl.pallas_call(
        kernel,
        out_shape=jax.ShapeDtypeStruct((3, rows, 128), out_dtype),
        grid=(nblocks,),
        in_specs=[
            pl.BlockSpec(memory_space=pltpu.MemorySpace.SMEM),        # folded scalars
            pl.BlockSpec((3, block_rows, 128), lambda i: (0, i, 0)),  # packed state tile
        ],
        out_specs=pl.BlockSpec((3, block_rows, 128), lambda i: (0, i, 0)),
        compiler_params=pltpu.CompilerParams(
            dimension_semantics=("parallel",),
        ),
    )(params, xt)


# ----------------------------------------------------------------------------
# Public entry points
# ----------------------------------------------------------------------------
def repressilator_forward(x, beta=1.0, n=1.0, k=1.0, gamma=1.0, *, nblocks=None):
    """Single RHS evaluation, drop-in for the PyTorch module: [B, 3] -> [B, 3]."""
    n_int = _static_int_exponent(n)
    params = _fold_params(beta, n, k, gamma)
    xt, nblocks, block_rows = pack_state(x, nblocks)
    out_t = _call(_make_rhs_kernel(n_int), params, xt, nblocks, block_rows, x.dtype)
    return unpack_state(out_t, x.shape[0])


def repressilator_rhs_packed(xt, beta, n, k, gamma, *, nblocks):
    """RHS directly on the packed (3, rows, 128) layout. Use this (together with
    pack_state/unpack_state) when the ODE state is kept packed across an
    integrator, so the per-call transpose/pad/slice HBM round-trips vanish."""
    n_int = _static_int_exponent(n)
    params = _fold_params(beta, n, k, gamma)
    block_rows = xt.shape[1] // nblocks
    return _call(_make_rhs_kernel(n_int), params, xt, nblocks, block_rows, xt.dtype)


def repressilator_euler(x0, beta=1.0, n=1.0, k=1.0, gamma=1.0, *,
                        dt, num_steps, nblocks=None):
    """num_steps forward-Euler steps fused into ONE pallas_call.
    TODO(synk): higher-order / adaptive integrators can reuse _rhs the same way."""
    n_int = _static_int_exponent(n)
    params = _fold_params(beta, n, k, gamma, dt)
    xt, nblocks, block_rows = pack_state(x0, nblocks)
    out_t = _call(_make_euler_kernel(n_int, num_steps), params, xt,
                  nblocks, block_rows, x0.dtype)
    return unpack_state(out_t, x0.shape[0])


# ----------------------------------------------------------------------------
# Pure-JAX reference + self-test
# ----------------------------------------------------------------------------
def _reference_rhs(x, beta, n, k, gamma):
    beta, n, k, gamma = (jnp.abs(jnp.asarray(p, jnp.float32))
                         for p in (beta, n, k, gamma))
    xr = jnp.maximum(x.astype(jnp.float32), 0.0) + _EPS
    d0 = beta / (1.0 + (xr[:, 2] / k) ** n) - gamma * xr[:, 0]
    d1 = beta / (1.0 + (xr[:, 0] / k) ** n) - gamma * xr[:, 1]
    d2 = beta / (1.0 + (xr[:, 1] / k) ** n) - gamma * xr[:, 2]
    return jnp.stack([d0, d1, d2], axis=1)


if __name__ == "__main__":
    key = jax.random.PRNGKey(0)

    # Case 1: module defaults (n=1 -> static integer-power path, zero transcendentals).
    B = 8
    x = jax.random.normal(key, (B, 3), dtype=jnp.float32)
    out1 = jax.block_until_ready(repressilator_forward(x, 1.0, 1.0, 1.0, 1.0))
    ref1 = _reference_rhs(x, 1.0, 1.0, 1.0, 1.0)
    assert out1.shape == (B, 3)
    assert jnp.allclose(out1, ref1, atol=1e-5, rtol=1e-5), "case 1 mismatch"

    # Case 2: non-integer parameters (general exp/log path).
    beta, n, k, gamma = 1.3, 2.5, 0.7, 0.4
    out2 = jax.block_until_ready(
        repressilator_forward(x, jnp.float32(beta), jnp.float32(n),
                              jnp.float32(k), jnp.float32(gamma)))
    ref2 = _reference_rhs(x, beta, n, k, gamma)
    assert jnp.allclose(out2, ref2, atol=1e-4, rtol=1e-4), "case 2 mismatch"

    # Case 3: larger batch -> >=2 "parallel" grid blocks over (3, R, 128) tiles.
    B3 = 4096
    x3 = jax.random.normal(jax.random.PRNGKey(1), (B3, 3), dtype=jnp.float32)
    out3 = jax.block_until_ready(repressilator_forward(x3, 1.0, 2.0, 0.5, 0.3))
    ref3 = _reference_rhs(x3, 1.0, 2.0, 0.5, 0.3)
    assert out3.shape == (B3, 3)
    assert jnp.allclose(out3, ref3, atol=1e-4, rtol=1e-4), "case 3 mismatch"

    # Case 4: fused Euler integrator — many RHS evaluations in one kernel launch.
    steps, dt = 16, 0.05
    out4 = jax.block_until_ready(
        repressilator_euler(x, 1.0, 1.0, 1.0, 1.0, dt=dt, num_steps=steps))
    xr = x
    for _ in range(steps):
        xr = xr + dt * _reference_rhs(xr, 1.0, 1.0, 1.0, 1.0)
    assert jnp.allclose(out4, xr, atol=1e-4, rtol=1e-4), "case 4 mismatch"

    print("KERNEL_OK")
</pallas_src>

<mosaic_0001>
module attributes {stable_mosaic.version = 11 : i64} {
  func.func @kernel(%arg0: i32, %arg1: memref<6xf32, #tpu.memory_space<smem>>, %arg2: memref<3x8x128xf32, #tpu.memory_space<vmem>>, %arg3: memref<3x8x128xf32, #tpu.memory_space<vmem>>) attributes {dimension_semantics = [#tpu.dimension_semantics<parallel>], iteration_bounds = array<i64: 1>, scalar_prefetch = 0 : i64, scratch_operands = 0 : i64, tpu.core_type = #tpu.core_type<tc>, window_params = [{transform_indices = @transform_0, window_bounds = array<i64: 6>}, {transform_indices = @transform_1, window_bounds = array<i64: 3, 8, 128>}, {transform_indices = @transform_2, window_bounds = array<i64: 3, 8, 128>}]} {
    %c0 = arith.constant 0 : index
    %0 = memref.load %arg1[%c0] : memref<6xf32, #tpu.memory_space<smem>>
    %c1 = arith.constant 1 : index
    %1 = memref.load %arg1[%c1] : memref<6xf32, #tpu.memory_space<smem>>
    %c4 = arith.constant 4 : index
    %2 = memref.load %arg1[%c4] : memref<6xf32, #tpu.memory_space<smem>>
    %c0_0 = arith.constant 0 : index
    %c0_1 = arith.constant 0 : index
    %c0_2 = arith.constant 0 : index
    %3 = vector.load %arg2[%c0_0, %c0_1, %c0_2] : memref<3x8x128xf32, #tpu.memory_space<vmem>>, vector<3x8x128xf32>
    %cst = arith.constant 0.000000e+00 : f32
    %4 = vector.broadcast %cst : f32 to vector<3x8x128xf32>
    %5 = arith.maximumf %3, %4 : vector<3x8x128xf32>
    %cst_3 = arith.constant 9.99999993E-9 : f32
    %6 = vector.broadcast %cst_3 : f32 to vector<3x8x128xf32>
    %7 = arith.addf %5, %6 : vector<3x8x128xf32>
    %8 = vector.broadcast %2 : f32 to vector<3x8x128xf32>
    %9 = arith.mulf %7, %8 : vector<3x8x128xf32>
    %cst_4 = arith.constant 1.000000e+00 : f32
    %10 = vector.broadcast %cst_4 : f32 to vector<3x8x128xf32>
    %11 = arith.addf %10, %9 : vector<3x8x128xf32>
    %12 = vector.broadcast %0 : f32 to vector<3x8x128xf32>
    %13 = arith.divf %12, %11 : vector<3x8x128xf32>
    %14 = vector.extract_strided_slice %13 {offsets = [2, 0, 0], sizes = [1, 8, 128], strides = [1, 1, 1]} : vector<3x8x128xf32> to vector<1x8x128xf32>
    %15 = vector.extract_strided_slice %13 {offsets = [0, 0, 0], sizes = [2, 8, 128], strides = [1, 1, 1]} : vector<3x8x128xf32> to vector<2x8x128xf32>
    %16 = tpu.concatenate %14, %15 in 0 : vector<1x8x128xf32>, vector<2x8x128xf32> -> vector<3x8x128xf32>
    %17 = vector.broadcast %1 : f32 to vector<3x8x128xf32>
    %18 = arith.mulf %17, %7 : vector<3x8x128xf32>
    %19 = arith.subf %16, %18 : vector<3x8x128xf32>
    %c0_5 = arith.constant 0 : index
    %c0_6 = arith.constant 0 : index
    %c0_7 = arith.constant 0 : index
    %20 = vector.load %arg3[%c0_5, %c0_6, %c0_7] : memref<3x8x128xf32, #tpu.memory_space<vmem>>, vector<3x8x128xf32>
    tpu.vector_store %arg3[%c0_5, %c0_6, %c0_7], %19 {strides = array<i32>} : memref<3x8x128xf32, #tpu.memory_space<vmem>>, vector<3x8x128xf32>,
    return
  }
  func.func @transform_0(%arg0: i32) -> i32 {
    %c0_i32 = arith.constant 0 : i32
    %c0_i32_0 = arith.constant 0 : i32
    return %c0_i32 : i32
  }
  func.func @transform_1(%arg0: i32) -> (i32, i32, i32) {
    %c0_i32 = arith.constant 0 : i32
    %c0_i32_0 = arith.constant 0 : i32
    %c0_i32_1 = arith.constant 0 : i32
    return %c0_i32, %arg0, %c0_i32_0 : i32, i32, i32
  }
  func.func @transform_2(%arg0: i32) -> (i32, i32, i32) {
    %c0_i32 = arith.constant 0 : i32
    %c0_i32_0 = arith.constant 0 : i32
    %c0_i32_1 = arith.constant 0 : i32
    return %c0_i32, %arg0, %c0_i32_0 : i32, i32, i32
  }
}

</mosaic_0001>

<bundles_post_ra>
// kernel: tpu_custom_call.1
= control target key start
LH: loop header
LB: loop body
LE: loop exit
PB: predicated region body
PF: predicated region fallthrough
CT: control target
= control target key end

     0   :  { %7 = vsyncpa [#allocation5], 0  ;;  %s268_s0 = inlined_call_operand.hbm [shape: f32[6], index: 0, kind: input, shape index: {}]   ;;  %s269_s1 = inlined_call_operand.hbm [shape: f32[3,8,128], index: 1, kind: input, shape index: {}]   ;;  %s270_s2 = inlined_call_operand.hbm [shape: f32[3,8,128], index: 2, kind: output, shape index: {}]  }
   0x1   :  { %8 = vsyncpa [#allocation3], 0 }
   0x2   :  { %9 = vsyncpa [#allocation4], 0  ;;  %s15_s11 = sshll.u32 %s268_s0, 4  ;;  %s23_s14 = sshll.u32 %s269_s1, 4  ;;  %s16_s11 = int_to_ptr.hbm [resolvable:$true] %s15_s11  ;;  %s24_s14 = int_to_ptr.hbm [resolvable:$true] %s23_s14 }
   0x3   :  { %s215_s15 = smov [#allocation2]   ;;  %s216_s16 = smov [#allocation6]  }
   0x4   :  { %18 = dma.hbm_to_smem %s16_s11, 16, %s215_s15, [#allocation5]  }
   0x5   :  { %s25_s17 = sshll.u32 %s216_s16, 4  ;;  %s217_s18 = smov 128   ;;  %s26_s17 = int_to_ptr.vmem [resolvable:$true] %s25_s17 }
   0x6   :  { %s218_s19 = smov 8  }
   0x7   :  { %31 = dma.hbm_to_vmem [thread:$0]  %s24_s14, 384, %s26_s17, [#allocation3], %s217_s18, %s217_s18, %s218_s19  }
   0x8   :  { %209 = dma.done.wait [#allocation5], 16  }
   0x9   :  { %210 = vsyncadd [#allocation5], 4294967280 }
   0xa   :  { %211 = dma.done.wait [#allocation3], 384  }
   0xb   :  { %212 = vsyncadd [#allocation3], 4294966912 }
   0xc   :  { %40 = sfence }
   0xd   :  { %v44_v0 = vld [vmem:[#allocation6] sm:$0xff]  ;;  %v46_v1 = vld [vmem:[#allocation6 + $0x10] sm:$0xff]  ;;  %v45_v2 = vld [vmem:[#allocation6 + $0x8] sm:$0xff]  ;;  %s137_s0 = sld [smem:[#allocation2 + $0x4]]  ;;  %s219_s21 = smov [#allocation7]  }
   0xe   :  { %v47_v3 = vmax.f32 %v44_v0, 0.0  ;;  %v49_v4 = vmax.f32 %v46_v1, 0.0  ;;  %v48_v5 = vmax.f32 %v45_v2, 0.0  ;;  %s136_s1 = sld [smem:[#allocation2 + $0x1]]  ;;  %s120_s22 = sshll.u32 %s219_s21, 4  ;;  %s121_s22 = int_to_ptr.vmem [resolvable:$true] %s120_s22 }
   0xf   :  { %s244_s20 = sld [smem:[#allocation2]]  ;;  %s122_s25 = sshll.u32 %s270_s2, 4  ;;  %s123_s25 = int_to_ptr.hbm [resolvable:$true] %s122_s25 }
  0x10   :  { %v50_v6 = vadd.f32 1e-08, %v47_v3  ;;  %v52_v7 = vadd.f32 1e-08, %v49_v4  ;;  %v51_v8 = vadd.f32 1e-08, %v48_v5 }
  0x13   :  { %v53_v9 = vstv %s137_s0 }
  0x14   :  { %v54_v10 = vmul.f32 %v53_v9, %v50_v6  ;;  %v56_v11 = vmul.f32 %v53_v9, %v52_v7  ;;  %v55_v12 = vmul.f32 %v53_v9, %v51_v8  ;;  %v106_v33 = vstv %s136_s1 }
  0x15   :  { %v60_v40 = vstv %s244_s20  ;;  %v108_v44 = vmul.f32 %v106_v33, %v51_v8  ;;  %v107_v47 = vmul.f32 %v106_v33, %v50_v6  ;;  %v109_v52 = vmul.f32 %v106_v33, %v52_v7 }
  0x16   :  { %v57_v13 = vadd.f32 1.0, %v54_v10  ;;  %v59_v14 = vadd.f32 1.0, %v56_v11  ;;  %v58_v15 = vadd.f32 1.0, %v55_v12 }
  0x18   :  { %143 = vrcp.f32 %v57_v13  ;;  %vm96_vm0 = vweird.f32 %v59_v14  ;;  %v100_v18 = vand.u32 2147483647, %v59_v14  ;;  %v102_v22 = vand.u32 2147483648, %v59_v14 }
  0x19   :  { %145 = vrcp.f32 %v59_v14  ;;  %vm66_vm1 = vweird.f32 %v57_v13  ;;  %v72_v23 = vand.u32 2147483648, %v57_v13  ;;  %v70_v25 = vand.u32 2147483647, %v57_v13 }
  0x1a   :  { %147 = vrcp.f32 %v58_v15  ;;  %vm81_vm4 = vweird.f32 %v58_v15  ;;  %v87_v28 = vand.u32 2147483648, %v58_v15  ;;  %v85_v31 = vand.u32 2147483647, %v58_v15 }
  0x1b   :  { %v73_v35 = vor.u32 1.1754944e-38, %v72_v23  ;;  %v103_v37 = vor.u32 1.1754944e-38, %v102_v22  ;;  %vm71_vm8 = vcmp.eq.f32.partialorder %v70_v25, 8.507059e+37  ;;  %vm101_vm9 = vcmp.eq.f32.partialorder %v100_v18, 8.507059e+37 }
  0x1c   :  { %v88_v42 = vor.u32 1.1754944e-38, %v87_v28  ;;  %vm86_vm11 = vcmp.eq.f32.partialorder %v85_v31, 8.507059e+37 }
  0x1e   :  { %v144_v16 = vpop.eup %143 }
  0x1f   :  { %v146_v17 = vpop.eup %145  ;;  %v62_v19 = vmul.f32 %v144_v16, %v57_v13  ;;  %vm67_vm2 = vweird.f32 %v144_v16 }
  0x20   :  { %v148_v20 = vpop.eup %147  ;;  %v92_v21 = vmul.f32 %v146_v17, %v59_v14  ;;  %vm97_vm3 = vweird.f32 %v146_v17  ;;  %vm247_vm6 = vmor %vm66_vm1, %vm67_vm2 }
  0x21   :  { %v63_v24 = vsub.f32 1.0, %v62_v19  ;;  %v77_v26 = vmul.f32 %v148_v20, %v58_v15  ;;  %vm82_vm5 = vweird.f32 %v148_v20  ;;  %vm252_vm7 = vmor %vm96_vm0, %vm97_vm3 }
  0x22   :  { %v93_v27 = vsub.f32 1.0, %v92_v21  ;;  %vm83_vm10 = vmor %vm81_vm4, %vm82_vm5 }
  0x23   :  { %v64_v29 = vmul.f32 %v144_v16, %v63_v24  ;;  %v78_v30 = vsub.f32 1.0, %v77_v26 }
  0x24   :  { %v94_v32 = vmul.f32 %v146_v17, %v93_v27 }
  0x25   :  { %v65_v38 = vadd.f32 %v144_v16, %v64_v29  ;;  %v79_v39 = vmul.f32 %v148_v20, %v78_v30 }
  0x26   :  { %v95_v41 = vadd.f32 %v146_v17, %v94_v32 }
  0x27   :  { %v69_v43 = vsel %vm247_vm6, %v144_v16, %v65_v38  ;;  %v80_v45 = vadd.f32 %v148_v20, %v79_v39 }
  0x28   :  { %v99_v46 = vsel %vm252_vm7, %v146_v17, %v95_v41  ;;  %v74_v48 = vsel %vm71_vm8, %v73_v35, %v69_v43 }
  0x29   :  { %v104_v49 = vsel %vm101_vm9, %v103_v37, %v99_v46  ;;  %v75_v50 = vmul.f32 %v74_v48, %v60_v40  ;;  %v84_v51 = vsel %vm83_vm10, %v148_v20, %v80_v45 }
  0x2a   :  { %v105_v53 = vmul.f32 %v104_v49, %v60_v40  ;;  %v89_v54 = vsel %vm86_vm11, %v88_v42, %v84_v51 }
  0x2b   :  { %v111_v55 = vsub.f32 %v75_v50, %v108_v44  ;;  %v90_v56 = vmul.f32 %v89_v54, %v60_v40 }
  0x2c   :  { %v110_v57 = vsub.f32 %v105_v53, %v107_v47 }
  0x2d   :  { %114 = vst [vmem:[#allocation7 + $0x8] sm:$0xff] %v111_v55  ;;  %v112_v58 = vsub.f32 %v90_v56, %v109_v52 }
  0x2e   :  { %113 = vst [vmem:[#allocation7] sm:$0xff] %v110_v57 }
  0x2f   :  { %115 = vst [vmem:[#allocation7 + $0x10] sm:$0xff] %v112_v58 }
  0x30   :  { %128 = dma.vmem_to_hbm [thread:$0]  %s121_s22, 384, %s123_s25, [#allocation4], %s217_s18, %s217_s18, %s218_s19  }
  0x31   :  { %213 = dma.done.wait [#allocation4], 384  }
  0x32   :  { %214 = vsyncadd [#allocation4], 4294966912 }
  0x33   :  { %133 = vsyncpa [#allocation3], 1 }
  0x34   :  { %134 = vsyncpa [#allocation4], 1 }
  0x35   :  { %135 = vsyncpa [#allocation5], 1 }

</bundles_post_ra>
